<compile_context>
chip_gen: v6e
topology: v6e:2x2x1
jax: 0.10.0
libtpu: 0.0.40
codegen_flags: <defaults>
</compile_context>

<pallas_src>
import jax
import jax.numpy as jnp
from jax.experimental import pallas as pl
from jax.experimental.pallas import tpu as pltpu

NEG_SLOPE = 0.01   # nn.LeakyReLU(negative_slope=0.01)
BN_EPS = 1e-5      # nn.BatchNorm1d default eps
LANE = 128
SUB_BF16 = 16      # bf16 sublane tile


def _round_up(x, m):
    return (x + m - 1) // m * m


def _leaky_relu(x):
    return jnp.where(x >= 0, x, NEG_SLOPE * x)


# --------------------------------------------------------------------------
# Phase 1: fc1 -> lrelu -> (bn1-folded) fc2 -> lrelu -> fc3 -> lrelu  => H
# --------------------------------------------------------------------------
def hidden_kernel(e_ref, w1_ref, b1_ref, w2_ref, b2_ref, w3_ref, b3_ref,
                  h_ref):
    h = jnp.dot(e_ref[...], w1_ref[...],
                preferred_element_type=jnp.float32) + b1_ref[...]
    h = _leaky_relu(h)
    h = jnp.dot(h.astype(jnp.bfloat16), w2_ref[...],
                preferred_element_type=jnp.float32) + b2_ref[...]
    h = _leaky_relu(h)
    h = jnp.dot(h.astype(jnp.bfloat16), w3_ref[...],
                preferred_element_type=jnp.float32) + b3_ref[...]
    h = _leaky_relu(h)
    h_ref[...] = h.astype(h_ref.dtype)


# --------------------------------------------------------------------------
# Phase 2: (bn2-folded) fc4: one (batch_tile, vocab_tile) block of logits.
# --------------------------------------------------------------------------
def logits_kernel(h_ref, w4_ref, b4_ref, o_ref):
    o_ref[...] = (jnp.dot(h_ref[...], w4_ref[...],
                          preferred_element_type=jnp.float32)
                  + b4_ref[...]).astype(o_ref.dtype)


# --------------------------------------------------------------------------
# Parameter construction / offline preparation
# --------------------------------------------------------------------------
def init_params(key, vocab_size, embedding_dim, hidden_dim, context_size):
    """Synthetic parameters with PyTorch module shapes / conventions."""
    ks = jax.random.split(key, 8)
    in_dim = embedding_dim * context_size
    h2 = hidden_dim // 2

    def lin(k, fan_in, fan_out):
        kw, kb = jax.random.split(k)
        w = jax.random.normal(kw, (fan_out, fan_in), jnp.float32) / jnp.sqrt(fan_in)
        b = 0.1 * jax.random.normal(kb, (fan_out,), jnp.float32)
        return w, b

    def bn(k, dim):
        k1, k2, k3, k4 = jax.random.split(k, 4)
        gamma = 1.0 + 0.1 * jax.random.normal(k1, (dim,), jnp.float32)
        beta = 0.1 * jax.random.normal(k2, (dim,), jnp.float32)
        mean = 0.1 * jax.random.normal(k3, (dim,), jnp.float32)
        var = 1.0 + 0.2 * jax.random.uniform(k4, (dim,), jnp.float32)
        return gamma, beta, mean, var

    return {
        "embedding": 0.5 * jax.random.normal(
            ks[0], (vocab_size, embedding_dim), jnp.float32),
        "fc1": lin(ks[1], in_dim, hidden_dim),
        "fc2": lin(ks[2], hidden_dim, hidden_dim),
        "fc3": lin(ks[3], hidden_dim, h2),
        "fc4": lin(ks[4], h2, vocab_size),
        "bn1": bn(ks[5], hidden_dim),
        "bn2": bn(ks[6], h2),
    }


def prepare_params(params, *, v_tile=1024):
    """One-time fold / transpose / pad / bf16-cast of PyTorch-layout params."""
    w1, b1 = params["fc1"]
    w2, b2 = params["fc2"]
    w3, b3 = params["fc3"]
    w4, b4 = params["fc4"]
    g1, be1, m1, v1 = params["bn1"]
    g2, be2, m2, v2 = params["bn2"]

    # Eval-mode BN is an affine map bn(x) = x*s + t; fold into the next linear.
    s1 = g1 * jax.lax.rsqrt(v1 + BN_EPS)
    t1 = be1 - m1 * s1
    s2 = g2 * jax.lax.rsqrt(v2 + BN_EPS)
    t2 = be2 - m2 * s2
    w2t = s1[:, None] * w2.T            # (hidden, hidden), (in, out) layout
    b2f = t1 @ w2.T + b2
    w4t = s2[:, None] * w4.T            # (h2, vocab)
    b4f = t2 @ w4.T + b4

    hidden, in_dim = w1.shape
    h2 = w3.shape[0]
    vocab = w4.shape[0]

    in_p = _round_up(in_dim, LANE)
    hid_p = _round_up(hidden, LANE)
    # fc4 contraction dim: sublane granularity only -> minimal w4 HBM bytes.
    h2_p = _round_up(h2, SUB_BF16)

    # Vocab tile: multiple of 128, no larger than the 128-padded vocab; vocab
    # is then padded UP to a whole number of tiles (pad region sliced off).
    v_tile_eff = min(_round_up(max(v_tile, LANE), LANE), _round_up(vocab, LANE))
    v_p = _round_up(vocab, v_tile_eff)

    def pad_mat(a, r, c):
        return jnp.pad(a, ((0, r - a.shape[0]), (0, c - a.shape[1])))

    def pad_row(v, c):
        v = v.reshape(1, -1)
        return jnp.pad(v, ((0, 0), (0, c - v.shape[1])))

    return {
        "emb": params["embedding"],
        "dims": (in_dim, in_p, hid_p, h2_p, vocab, v_p, v_tile_eff),
        "w1": pad_mat(w1.T, in_p, hid_p).astype(jnp.bfloat16),
        "b1": pad_row(b1, hid_p).astype(jnp.float32),
        "w2": pad_mat(w2t, hid_p, hid_p).astype(jnp.bfloat16),
        "b2": pad_row(b2f, hid_p).astype(jnp.float32),
        "w3": pad_mat(w3.T, hid_p, h2_p).astype(jnp.bfloat16),
        "b3": pad_row(b3, h2_p).astype(jnp.float32),
        "w4": pad_mat(w4t, h2_p, v_p).astype(jnp.bfloat16),
        "b4": pad_row(b4f, v_p).astype(jnp.float32),
    }


def _vmem_limit(block_bytes):
    # double-buffered blocks + headroom, clamped to a v7x-safe 64 MiB ceiling.
    need = 2 * block_bytes + (4 << 20)
    return int(min(max(need, 32 << 20), 64 << 20))


# --------------------------------------------------------------------------
# Forward
# --------------------------------------------------------------------------
def neural_lm1_forward(x_idx, prep, *, b_tile=256, out_dtype=jnp.float32):
    """x_idx: (B, context_size) int32 token indices; prep from prepare_params."""
    B = x_idx.shape[0]
    in_dim, in_p, hid_p, h2_p, vocab, v_p, v_tile = prep["dims"]

    # Embedding lookup + flatten kept as XLA gather glue (cheap vs matmuls).
    e = prep["emb"][x_idx].reshape(B, -1)

    # Batch tiling: bf16 sublane tile is 16; 256-row tiles for big batches.
    b_tile = _round_up(b_tile, SUB_BF16)
    if B <= b_tile:
        b_pad = _round_up(max(B, SUB_BF16), SUB_BF16)
        b_tile = b_pad
    else:
        b_pad = _round_up(B, b_tile)
    e = jnp.pad(e, ((0, b_pad - B), (0, in_p - in_dim))).astype(jnp.bfloat16)

    n_b = b_pad // b_tile
    n_v = v_p // v_tile
    out_itemsize = jnp.dtype(out_dtype).itemsize

    # -------- Phase 1: hidden state H = (b_pad, h2_p) bf16 ----------------
    const1 = lambda b: (0, 0)
    blk1_bytes = (b_tile * in_p * 2 + in_p * hid_p * 2 + hid_p * 4
                  + hid_p * hid_p * 2 + hid_p * 4 + hid_p * h2_p * 2
                  + h2_p * 4 + b_tile * h2_p * 2)
    ce1 = pl.CostEstimate(
        flops=2 * b_pad * (in_p * hid_p + hid_p * hid_p + hid_p * h2_p),
        transcendentals=0,
        bytes_accessed=int(b_pad * in_p * 2 + in_p * hid_p * 2
                           + hid_p * hid_p * 2 + hid_p * h2_p * 2
                           + (2 * hid_p + h2_p) * 4 + b_pad * h2_p * 2))
    h = pl.pallas_call(
        hidden_kernel,
        out_shape=jax.ShapeDtypeStruct((b_pad, h2_p), jnp.bfloat16),
        grid_spec=pltpu.PrefetchScalarGridSpec(
            num_scalar_prefetch=0,
            grid=(n_b,),
            in_specs=[
                pl.BlockSpec((b_tile, in_p), lambda b: (b, 0)),   # embeds
                pl.BlockSpec((in_p, hid_p), const1),              # w1^T
                pl.BlockSpec((1, hid_p), const1),                 # b1
                pl.BlockSpec((hid_p, hid_p), const1),             # w2^T (bn1 folded)
                pl.BlockSpec((1, hid_p), const1),                 # b2 (bn1 folded)
                pl.BlockSpec((hid_p, h2_p), const1),              # w3^T
                pl.BlockSpec((1, h2_p), const1),                  # b3
            ],
            out_specs=pl.BlockSpec((b_tile, h2_p), lambda b: (b, 0)),
        ),
        compiler_params=pltpu.CompilerParams(
            dimension_semantics=("parallel",),
            vmem_limit_bytes=_vmem_limit(blk1_bytes),
        ),
        cost_estimate=ce1,
    )(e, prep["w1"], prep["b1"], prep["w2"], prep["b2"],
      prep["w3"], prep["b3"])

    # -------- Phase 2: fc4 (bn2 folded). Vocab OUTER, batch inner ---------
    # w4/b4 index_maps are constant over the inner batch axis, so each w4
    # tile is DMA'd from HBM exactly once; tiny H tiles stream instead.
    blk2_bytes = (b_tile * h2_p * 2 + h2_p * v_tile * 2 + v_tile * 4
                  + b_tile * v_tile * out_itemsize)
    ce2 = pl.CostEstimate(
        flops=2 * b_pad * h2_p * v_p,
        transcendentals=0,
        bytes_accessed=int(n_v * b_pad * h2_p * 2 + h2_p * v_p * 2 + v_p * 4
                           + b_pad * v_p * out_itemsize))
    logits = pl.pallas_call(
        logits_kernel,
        out_shape=jax.ShapeDtypeStruct((b_pad, v_p), out_dtype),
        grid_spec=pltpu.PrefetchScalarGridSpec(
            num_scalar_prefetch=0,
            grid=(n_v, n_b),
            in_specs=[
                pl.BlockSpec((b_tile, h2_p), lambda v, b: (b, 0)),   # H
                pl.BlockSpec((h2_p, v_tile), lambda v, b: (0, v)),   # w4^T (bn2 folded)
                pl.BlockSpec((1, v_tile), lambda v, b: (0, v)),      # b4 (bn2 folded)
            ],
            out_specs=pl.BlockSpec((b_tile, v_tile), lambda v, b: (b, v)),
        ),
        compiler_params=pltpu.CompilerParams(
            dimension_semantics=("parallel", "parallel"),
            vmem_limit_bytes=_vmem_limit(blk2_bytes),
        ),
        cost_estimate=ce2,
    )(h, prep["w4"], prep["b4"])

    return logits[:B, :vocab]


# --------------------------------------------------------------------------
# Pure-JAX f32 reference with the original (un-folded) eval-mode semantics.
# --------------------------------------------------------------------------
def reference_forward(x_idx, params):
    e = params["embedding"][x_idx].reshape(x_idx.shape[0], -1)
    w1, b1 = params["fc1"]
    w2, b2 = params["fc2"]
    w3, b3 = params["fc3"]
    w4, b4 = params["fc4"]
    g1, be1, m1, v1 = params["bn1"]
    g2, be2, m2, v2 = params["bn2"]
    lr = lambda t: jnp.where(t >= 0, t, NEG_SLOPE * t)
    h = lr(e @ w1.T + b1)
    h = (h - m1) / jnp.sqrt(v1 + BN_EPS) * g1 + be1   # bn1 (eval)
    h = lr(h @ w2.T + b2)                             # dropout = identity (eval)
    h = lr(h @ w3.T + b3)
    h = (h - m2) / jnp.sqrt(v2 + BN_EPS) * g2 + be2   # bn2 (eval)
    return h @ w4.T + b4


if __name__ == "__main__":
    # Small shapes consistent with the module: ctx=3, hidden even (h2=32,
    # exercising the sub-128 fc4 contraction dim), vocab not a multiple of
    # 128 or v_tile (exercising the pad-up path), batch not a multiple of 16.
    vocab_size = 2000
    embedding_dim = 32
    hidden_dim = 64        # hidden_dim // 2 = 32
    context_size = 3
    batch = 50

    key = jax.random.PRNGKey(0)
    pkey, xkey = jax.random.split(key)
    params = init_params(pkey, vocab_size, embedding_dim, hidden_dim,
                         context_size)
    prep = prepare_params(params, v_tile=512)   # 4 vocab tiles (v_p = 2048)

    x = jax.random.randint(xkey, (batch, context_size), 0, vocab_size,
                           dtype=jnp.int32)

    out = neural_lm1_forward(x, prep)
    out = jax.block_until_ready(out)
    assert out.shape == (batch, vocab_size)
    assert out.dtype == jnp.float32

    ref = reference_forward(x, params)
    # bf16 matmul inputs (intentional, for MXU rate) => loosened tolerance.
    assert jnp.allclose(out, ref, atol=5e-2, rtol=5e-2), (
        float(jnp.max(jnp.abs(out - ref))))

    print("KERNEL_OK")
</pallas_src>

<mosaic_0001>
module attributes {stable_mosaic.version = 11 : i64} {
  func.func @hidden_kernel(%arg0: i32, %arg1: memref<64x128xbf16, #tpu.memory_space<vmem>>, %arg2: memref<128x128xbf16, #tpu.memory_space<vmem>>, %arg3: memref<1x128xf32, #tpu.memory_space<vmem>>, %arg4: memref<128x128xbf16, #tpu.memory_space<vmem>>, %arg5: memref<1x128xf32, #tpu.memory_space<vmem>>, %arg6: memref<128x32xbf16, #tpu.memory_space<vmem>>, %arg7: memref<1x32xf32, #tpu.memory_space<vmem>>, %arg8: memref<64x32xbf16, #tpu.memory_space<vmem>>) attributes {dimension_semantics = [#tpu.dimension_semantics<parallel>], iteration_bounds = array<i64: 1>, scalar_prefetch = 0 : i64, scratch_operands = 0 : i64, tpu.core_type = #tpu.core_type<tc>, window_params = [{transform_indices = @transform_0, window_bounds = array<i64: 64, 128>}, {pipeline_mode = #tpu.pipeline_mode<synchronous>, transform_indices = @transform_1, window_bounds = array<i64: 128, 128>}, {pipeline_mode = #tpu.pipeline_mode<synchronous>, transform_indices = @transform_2, window_bounds = array<i64: 1, 128>}, {pipeline_mode = #tpu.pipeline_mode<synchronous>, transform_indices = @transform_3, window_bounds = array<i64: 128, 128>}, {pipeline_mode = #tpu.pipeline_mode<synchronous>, transform_indices = @transform_4, window_bounds = array<i64: 1, 128>}, {pipeline_mode = #tpu.pipeline_mode<synchronous>, transform_indices = @transform_5, window_bounds = array<i64: 128, 32>}, {pipeline_mode = #tpu.pipeline_mode<synchronous>, transform_indices = @transform_6, window_bounds = array<i64: 1, 32>}, {transform_indices = @transform_7, window_bounds = array<i64: 64, 32>}]} {
    %c0 = arith.constant 0 : index
    %c0_0 = arith.constant 0 : index
    %0 = vector.load %arg1[%c0, %c0_0] : memref<64x128xbf16, #tpu.memory_space<vmem>>, vector<64x128xbf16>
    %c0_1 = arith.constant 0 : index
    %c0_2 = arith.constant 0 : index
    %1 = vector.load %arg2[%c0_1, %c0_2] : memref<128x128xbf16, #tpu.memory_space<vmem>>, vector<128x128xbf16>
    %cst = arith.constant dense<0.000000e+00> : vector<64x128xf32>
    %2 = tpu.matmul %0, %1, %cst {dimension_numbers = #tpu.dot_dimension_numbers<[1], [0], [0], [1], [0, 0, 1, 1], [], []>} : vector<64x128xbf16>, vector<128x128xbf16>, vector<64x128xf32> -> vector<64x128xf32>
    %c0_3 = arith.constant 0 : index
    %c0_4 = arith.constant 0 : index
    %3 = vector.load %arg3[%c0_3, %c0_4] : memref<1x128xf32, #tpu.memory_space<vmem>>, vector<1x128xf32>
    %4 = vector.broadcast %3 : vector<1x128xf32> to vector<64x128xf32>
    %5 = arith.addf %2, %4 : vector<64x128xf32>
    %cst_5 = arith.constant 0.000000e+00 : f32
    %6 = vector.broadcast %cst_5 : f32 to vector<64x128xf32>
    %7 = arith.cmpf oge, %5, %6 : vector<64x128xf32>
    %cst_6 = arith.constant 0.00999999977 : f32
    %8 = vector.broadcast %cst_6 : f32 to vector<64x128xf32>
    %9 = arith.mulf %8, %5 : vector<64x128xf32>
    %10 = arith.select %7, %5, %9 : vector<64x128xi1>, vector<64x128xf32>
    %11 = arith.truncf %10 : vector<64x128xf32> to vector<64x128xbf16>
    %c0_7 = arith.constant 0 : index
    %c0_8 = arith.constant 0 : index
    %12 = vector.load %arg4[%c0_7, %c0_8] : memref<128x128xbf16, #tpu.memory_space<vmem>>, vector<128x128xbf16>
    %cst_9 = arith.constant dense<0.000000e+00> : vector<64x128xf32>
    %13 = tpu.matmul %11, %12, %cst_9 {dimension_numbers = #tpu.dot_dimension_numbers<[1], [0], [0], [1], [0, 0, 1, 1], [], []>} : vector<64x128xbf16>, vector<128x128xbf16>, vector<64x128xf32> -> vector<64x128xf32>
    %c0_10 = arith.constant 0 : index
    %c0_11 = arith.constant 0 : index
    %14 = vector.load %arg5[%c0_10, %c0_11] : memref<1x128xf32, #tpu.memory_space<vmem>>, vector<1x128xf32>
    %15 = vector.broadcast %14 : vector<1x128xf32> to vector<64x128xf32>
    %16 = arith.addf %13, %15 : vector<64x128xf32>
    %cst_12 = arith.constant 0.000000e+00 : f32
    %17 = vector.broadcast %cst_12 : f32 to vector<64x128xf32>
    %18 = arith.cmpf oge, %16, %17 : vector<64x128xf32>
    %cst_13 = arith.constant 0.00999999977 : f32
    %19 = vector.broadcast %cst_13 : f32 to vector<64x128xf32>
    %20 = arith.mulf %19, %16 : vector<64x128xf32>
    %21 = arith.select %18, %16, %20 : vector<64x128xi1>, vector<64x128xf32>
    %22 = arith.truncf %21 : vector<64x128xf32> to vector<64x128xbf16>
    %c0_14 = arith.constant 0 : index
    %c0_15 = arith.constant 0 : index
    %23 = vector.load %arg6[%c0_14, %c0_15] : memref<128x32xbf16, #tpu.memory_space<vmem>>, vector<128x32xbf16>
    %cst_16 = arith.constant dense<0.000000e+00> : vector<64x32xf32>
    %24 = tpu.matmul %22, %23, %cst_16 {dimension_numbers = #tpu.dot_dimension_numbers<[1], [0], [0], [1], [0, 0, 1, 1], [], []>} : vector<64x128xbf16>, vector<128x32xbf16>, vector<64x32xf32> -> vector<64x32xf32>
    %c0_17 = arith.constant 0 : index
    %c0_18 = arith.constant 0 : index
    %25 = vector.load %arg7[%c0_17, %c0_18] : memref<1x32xf32, #tpu.memory_space<vmem>>, vector<1x32xf32>
    %26 = vector.broadcast %25 : vector<1x32xf32> to vector<64x32xf32>
    %27 = arith.addf %24, %26 : vector<64x32xf32>
    %cst_19 = arith.constant 0.000000e+00 : f32
    %28 = vector.broadcast %cst_19 : f32 to vector<64x32xf32>
    %29 = arith.cmpf oge, %27, %28 : vector<64x32xf32>
    %cst_20 = arith.constant 0.00999999977 : f32
    %30 = vector.broadcast %cst_20 : f32 to vector<64x32xf32>
    %31 = arith.mulf %30, %27 : vector<64x32xf32>
    %32 = arith.select %29, %27, %31 : vector<64x32xi1>, vector<64x32xf32>
    %33 = arith.truncf %32 : vector<64x32xf32> to vector<64x32xbf16>
    %c0_21 = arith.constant 0 : index
    %c0_22 = arith.constant 0 : index
    %34 = vector.load %arg8[%c0_21, %c0_22] : memref<64x32xbf16, #tpu.memory_space<vmem>>, vector<64x32xbf16>
    tpu.vector_store %arg8[%c0_21, %c0_22], %33 {strides = array<i32>} : memref<64x32xbf16, #tpu.memory_space<vmem>>, vector<64x32xbf16>,
    return
  }
  func.func @transform_0(%arg0: i32) -> (i32, i32) {
    %c0_i32 = arith.constant 0 : i32
    %c0_i32_0 = arith.constant 0 : i32
    return %arg0, %c0_i32 : i32, i32
  }
  func.func @transform_1(%arg0: i32) -> (i32, i32) {
    %c0_i32 = arith.constant 0 : i32
    %c0_i32_0 = arith.constant 0 : i32
    %c0_i32_1 = arith.constant 0 : i32
    return %c0_i32, %c0_i32_0 : i32, i32
  }
  func.func @transform_2(%arg0: i32) -> (i32, i32) {
    %c0_i32 = arith.constant 0 : i32
    %c0_i32_0 = arith.constant 0 : i32
    %c0_i32_1 = arith.constant 0 : i32
    return %c0_i32, %c0_i32_0 : i32, i32
  }
  func.func @transform_3(%arg0: i32) -> (i32, i32) {
    %c0_i32 = arith.constant 0 : i32
    %c0_i32_0 = arith.constant 0 : i32
    %c0_i32_1 = arith.constant 0 : i32
    return %c0_i32, %c0_i32_0 : i32, i32
  }
  func.func @transform_4(%arg0: i32) -> (i32, i32) {
    %c0_i32 = arith.constant 0 : i32
    %c0_i32_0 = arith.constant 0 : i32
    %c0_i32_1 = arith.constant 0 : i32
    return %c0_i32, %c0_i32_0 : i32, i32
  }
  func.func @transform_5(%arg0: i32) -> (i32, i32) {
    %c0_i32 = arith.constant 0 : i32
    %c0_i32_0 = arith.constant 0 : i32
    %c0_i32_1 = arith.constant 0 : i32
    return %c0_i32, %c0_i32_0 : i32, i32
  }
  func.func @transform_6(%arg0: i32) -> (i32, i32) {
    %c0_i32 = arith.constant 0 : i32
    %c0_i32_0 = arith.constant 0 : i32
    %c0_i32_1 = arith.constant 0 : i32
    return %c0_i32, %c0_i32_0 : i32, i32
  }
  func.func @transform_7(%arg0: i32) -> (i32, i32) {
    %c0_i32 = arith.constant 0 : i32
    %c0_i32_0 = arith.constant 0 : i32
    return %arg0, %c0_i32 : i32, i32
  }
}

</mosaic_0001>

<bundles_post_ra>
// kernel: tpu_custom_call.1
= control target key start
LH: loop header
LB: loop body
LE: loop exit
PB: predicated region body
PF: predicated region fallthrough
CT: control target
= control target key end

     0   :  { %12 = vsyncpa [#allocation3], 0  ;;  %s1014_s0 = inlined_call_operand.hbm [shape: bf16[64,128], index: 0, kind: input, shape index: {}]   ;;  %s1015_s1 = inlined_call_operand.vmem [shape: bf16[128,128], index: 1, kind: input, shape index: {}]   ;;  %s1016_s2 = inlined_call_operand.vmem [shape: f32[1,128], index: 2, kind: input, shape index: {}]   ;;  %s1017_s3 = inlined_call_operand.hbm [shape: bf16[128,128], index: 3, kind: input, shape index: {}]   ;;  %s1018_s4 = inlined_call_operand.vmem [shape: f32[1,128], index: 4, kind: input, shape index: {}]   ;;  %s1019_s5 = inlined_call_operand.vmem [shape: bf16[128,32], index: 5, kind: input, shape index: {}]   ;;  %s1020_s6 = inlined_call_operand.vmem [shape: f32[1,32], index: 6, kind: input, shape index: {}]   ;;  %s1021_s7 = inlined_call_operand.vmem [shape: bf16[64,32], index: 7, kind: output, shape index: {}]  }
   0x1   :  { %13 = vsyncpa [#allocation5], 0  ;;  %s869_s24 = smov [#allocation2]  }
   0x2   :  { %s19_s25 = sshll.u32 %s869_s24, 4  ;;  %s20_s25 = int_to_ptr.vmem [resolvable:$true] %s19_s25 }
   0x3   :  { %s833_s26 = scalar_lea.vmem %s20_s25, 512  ;;  %p838_p1 = scmp.lt.s32.totalorder %s20_s25, %s20_s25 }
   0x4   :  { %p834_p0 = scmp.ne.s32.totalorder %s20_s25, %s833_s26  ;;  %p839_p2 = scmp.lt.s32.totalorder %s833_s26, %s833_s26 }
   0x6   :  { %p840_p3 = por %p839_p2, %p838_p1 }
   0x8   :  { %p841_p4 = pnand %p840_p3, %p834_p0 }
   0xa   :  { %844 = shalt.err (!%p841_p4)
}
   0xb   :  { %s870_s27 = smov 64   ;;  %s871_s28 = smov 4  }
   0xc   :  { %25 = dma.hbm_to_vmem [thread:$0]  %s1014_s0, 512, %s20_s25, [#allocation3], %s870_s27, %s870_s27, %s871_s28  }
   0xd   :  { %s872_s8 = smov [#allocation4]  }
   0xe   :  { %s35_s9 = sshll.u32 %s872_s8, 4  ;;  %s36_s9 = int_to_ptr.vmem [resolvable:$true] %s35_s9 }
   0xf   :  { %s853_s10 = scalar_lea.vmem %s36_s9, 1024  ;;  %p858_p6 = scmp.lt.s32.totalorder %s36_s9, %s36_s9 }
  0x10   :  { %p854_p5 = scmp.ne.s32.totalorder %s36_s9, %s853_s10  ;;  %p859_p7 = scmp.lt.s32.totalorder %s853_s10, %s853_s10 }
  0x12   :  { %p860_p8 = por %p859_p7, %p858_p6 }
  0x14   :  { %p861_p9 = pnand %p860_p8, %p854_p5 }
  0x16   :  { %864 = shalt.err (!%p861_p9)
}
  0x17   :  { %41 = dma.hbm_to_vmem [thread:$0]  %s1017_s3, 1024, %s36_s9, [#allocation5], %s870_s27, %s870_s27, %s871_s28  }
  0x18   :  { %865 = dma.done.wait [#allocation3], 512  }
  0x19   :  { %866 = vsyncadd [#allocation3], 4294966784 }
  0x1a   :  { %867 = dma.done.wait [#allocation5], 1024  }
  0x1b   :  { %868 = vsyncadd [#allocation5], 4294966272  ;;  %v797_v0 = vld [vmem:[%s1015_s1 + $0x38] sm:$0xff]   ;;  %v798_v1 = vld [vmem:[%s1015_s1 + $0x30] sm:$0xff]  }
  0x1c   :  { %705 = vmatprep.subr.bf16.mxu0 %v797_v0  ;;  %v799_v2 = vld [vmem:[%s1015_s1 + $0x28] sm:$0xff]   ;;  %v800_v3 = vld [vmem:[%s1015_s1 + $0x20] sm:$0xff]   ;;  %v801_v5 = vld [vmem:[%s1015_s1 + $0x18] sm:$0xff]  }
  0x1d   :  { %706 = vmatpush3.bf16.msra.mxu0 %v797_v0  ;;  %v805_v4 = vld [vmem:[#allocation2] sm:$0xff]   ;;  %v809_v6 = vld [vmem:[#allocation4 + $0x38] sm:$0xff]   ;;  %v810_v7 = vld [vmem:[#allocation4 + $0x30] sm:$0xff]  }
  0x1e   :  { %707 = vmatprep.subr.bf16.mxu0 %v798_v1  ;;  %721 = vmatprep.mubr.bf16.mxu0 %v805_v4  ;;  %v802_v8 = vld [vmem:[%s1015_s1 + $0x10] sm:$0xff]   ;;  %v811_v9 = vld [vmem:[#allocation4 + $0x28] sm:$0xff]   ;;  %v812_v11 = vld [vmem:[#allocation4 + $0x20] sm:$0xff]  }
  0x1f   :  { %729 = vmatprep.subr.bf16.mxu1 %v809_v6  ;;  %v803_v10 = vld [vmem:[%s1015_s1 + $0x8] sm:$0xff]   ;;  %v804_v12 = vld [vmem:[%s1015_s1] sm:$0xff]   ;;  %v813_v13 = vld [vmem:[#allocation4 + $0x18] sm:$0xff]  }
  0x20   :  { %730 = vmatpush3.bf16.msra.mxu1 %v809_v6  ;;  %v806_v14 = vld [vmem:[#allocation2 + $0x8] sm:$0xff]   ;;  %v807_v15 = vld [vmem:[#allocation2 + $0x10] sm:$0xff]   ;;  %v808_v16 = vld [vmem:[#allocation2 + $0x18] sm:$0xff]  }
  0x21   :  { %708 = vmatpush3.bf16.msra.mxu0 %v798_v1  ;;  %731 = vmatprep.subr.bf16.mxu1 %v810_v7  ;;  %v814_v17 = vld [vmem:[#allocation4 + $0x10] sm:$0xff]   ;;  %v815_v18 = vld [vmem:[#allocation4 + $0x8] sm:$0xff]   ;;  %v816_v19 = vld [vmem:[#allocation4] sm:$0xff]  }
  0x22   :  { %709 = vmatprep.subr.bf16.mxu0 %v799_v2  ;;  %v817_v20 = vld [vmem:[%s1019_s5 + $0x38] sm:$0xff]   ;;  %v949_v21 = vld [vmem:[%s1019_s5 + $0x30] sm:$0xff]   ;;  %v819_v22 = vld [vmem:[%s1019_s5 + $0x28] sm:$0xff]  }
  0x23   :  { %v820_v23 = vld [vmem:[%s1019_s5 + $0x20] sm:$0xff]   ;;  %v821_v24 = vld [vmem:[%s1019_s5 + $0x18] sm:$0xff]   ;;  %v822_v62 = vld [vmem:[%s1019_s5 + $0x10] sm:$0xff]  }
  0x24   :  { %732 = vmatpush3.bf16.msra.mxu1 %v810_v7  ;;  %v622_v26 = vld [vmem:[%s1016_s2] ss:$0 sm:$0xff]  ;;  %v823_v63 = vld [vmem:[%s1019_s5 + $0x8] sm:$0xff]  }
  0x25   :  { %710 = vmatpush3.bf16.msra.mxu0 %v799_v2  ;;  %733 = vmatprep.subr.bf16.mxu1 %v811_v9  ;;  %v824_v0 = vld [vmem:[%s1019_s5] sm:$0xff]  }
  0x26   :  { %711 = vmatprep.subr.bf16.mxu0 %v800_v3  ;;  %v635_v2 = vld [vmem:[%s1018_s4] ss:$0 sm:$0xff] }
  0x28   :  { %734 = vmatpush3.bf16.msra.mxu1 %v811_v9 }
  0x29   :  { %712 = vmatpush3.bf16.msra.mxu0 %v800_v3  ;;  %735 = vmatprep.subr.bf16.mxu1 %v812_v11 }
  0x2a   :  { %713 = vmatprep.subr.bf16.mxu0 %v801_v5 }
  0x2c   :  { %736 = vmatpush3.bf16.msra.mxu1 %v812_v11 }
  0x2d   :  { %714 = vmatpush3.bf16.msra.mxu0 %v801_v5  ;;  %737 = vmatprep.subr.bf16.mxu1 %v813_v13 }
  0x2e   :  { %715 = vmatprep.subr.bf16.mxu0 %v802_v8 }
  0x30   :  { %738 = vmatpush3.bf16.msra.mxu1 %v813_v13 }
  0x31   :  { %716 = vmatpush3.bf16.msra.mxu0 %v802_v8  ;;  %739 = vmatprep.subr.bf16.mxu1 %v814_v17 }
  0x32   :  { %717 = vmatprep.subr.bf16.mxu0 %v803_v10 }
  0x34   :  { %740 = vmatpush3.bf16.msra.mxu1 %v814_v17 }
  0x35   :  { %718 = vmatpush3.bf16.msra.mxu0 %v803_v10  ;;  %741 = vmatprep.subr.bf16.mxu1 %v815_v18 }
  0x36   :  { %719 = vmatprep.subr.bf16.mxu0 %v804_v12 }
  0x38   :  { %742 = vmatpush3.bf16.msra.mxu1 %v815_v18 }
  0x39   :  { %720 = vmatpush3.bf16.msra.mxu0 %v804_v12  ;;  %743 = vmatprep.subr.bf16.mxu1 %v816_v19 }
  0x3a   :  { %753 = vmatprep.subr.bf16.mxu0 %v817_v20 }
  0x3c   :  { %722 = vmatmul.mubr.bf16.vlgmr.msra.gmra.mxu0 %v806_v14  ;;  %744 = vmatpush3.bf16.msra.mxu1 %v816_v19 }
  0x3d   :  { %725 = vmatprep.mubr.bf16.mxu0 %v807_v15  ;;  %777 = vmatprep.subr.bf16.mxu1 %v817_v20 }
  0x3e   :  { %754 = vmatpush3.bf16.msra.mxu0 %v817_v20 }
  0x3f   :  { %755 = vmatprep.subr.bf16.mxu0 %v949_v21 }
  0x42   :  { %756 = vmatpush3.bf16.msra.mxu0 %v949_v21 }
  0x43   :  { %757 = vmatprep.subr.bf16.mxu0 %v819_v22 }
  0x44   :  { %726 = vmatmul.mubr.bf16.gmra.mxu0 %v808_v16 }
  0x46   :  { %758 = vmatpush3.bf16.msra.mxu0 %v819_v22 }
  0x47   :  { %759 = vmatprep.subr.bf16.mxu0 %v820_v23 }
  0x4a   :  { %760 = vmatpush3.bf16.msra.mxu0 %v820_v23 }
  0x4b   :  { %761 = vmatprep.subr.bf16.mxu0 %v821_v24 }
  0x4e   :  { %762 = vmatpush3.bf16.msra.mxu0 %v821_v24 }
  0x4f   :  { %763 = vmatprep.subr.bf16.mxu0 %v822_v62 }
  0x52   :  { %764 = vmatpush3.bf16.msra.mxu0 %v822_v62 }
  0x53   :  { %765 = vmatprep.subr.bf16.mxu0 %v823_v63 }
  0x56   :  { %766 = vmatpush3.bf16.msra.mxu0 %v823_v63 }
  0x57   :  { %767 = vmatprep.subr.bf16.mxu0 %v824_v0 }
  0x5a   :  { %768 = vmatpush3.bf16.msra.mxu0 %v824_v0 }
  0xfc   :  { %v723_v25 = vpop.f32.mrf.mxu0 }
  0xfd   :  { %v201_v29 = vadd.f32 %v723_v25, %v622_v26 }
  0xfe   :  { %v192_v27 = vpop.f32.mrf.mxu0 }
  0xff   :  { %v193_v28 = vadd.f32 %v622_v26, %v192_v27  ;;  %v233_v36 = vmul.f32 0.01, %v201_v29  ;;  %vm225_vm2 = vcmp.ge.f32.partialorder %v201_v29, 0.0 }
 0x100   :  { %v724_v30 = vpop.f32.mrf.mxu0 }
 0x101   :  { %v204_v31 = vadd.f32 %v724_v30, %v622_v26  ;;  %v231_v33 = vmul.f32 0.01, %v193_v28  ;;  %vm223_vm1 = vcmp.ge.f32.partialorder %v193_v28, 0.0  ;;  %v241_v47 = vsel %vm225_vm2, %v201_v29, %v233_v36 }
 0x102   :  { %v195_v32 = vpop.f32.mrf.mxu0 }
 0x103   :  { %vm226_vm0 = vcmp.ge.f32.partialorder %v204_v31, 0.0  ;;  %v234_v34 = vmul.f32 0.01, %v204_v31  ;;  %v196_v35 = vadd.f32 %v622_v26, %v195_v32  ;;  %v239_v42 = vsel %vm223_vm1, %v193_v28, %v231_v33 }
 0x104   :  { %v727_v37 = vpop.f32.mrf.mxu0  ;;  %vm607_vm1 = vcmask 257024  }
 0x105   :  { %v232_v38 = vmul.f32 0.01, %v196_v35  ;;  %vm224_vm3 = vcmp.ge.f32.partialorder %v196_v35, 0.0  ;;  %v242_v40 = vsel %vm226_vm0, %v204_v31, %v234_v34  ;;  %v217_v44 = vadd.f32 %v727_v37, %v622_v26 }
 0x106   :  { %v208_v39 = vpop.f32.mrf.mxu0  ;;  %v248_v49 = vpack.c.bf16 %v242_v40, %v241_v47 }
 0x107   :  { %v209_v41 = vadd.f32 %v622_v26, %v208_v39  ;;  %v240_v43 = vsel %vm224_vm3, %v196_v35, %v232_v38  ;;  %v237_v54 = vmul.f32 0.01, %v217_v44  ;;  %vm229_vm6 = vcmp.ge.f32.partialorder %v217_v44, 0.0  ;;  %v644_v38 = vld [vmem:[%s1020_s6] ss:$0 sm:$0xff] }
 0x108   :  { %v728_v45 = vpop.f32.mrf.mxu0  ;;  %v247_v46 = vpack.c.bf16 %v240_v43, %v239_v42 }
 0x109   :  { %v220_v48 = vadd.f32 %v728_v45, %v622_v26  ;;  %v235_v51 = vmul.f32 0.01, %v209_v41  ;;  %vm227_vm5 = vcmp.ge.f32.partialorder %v209_v41, 0.0  ;;  %v245_v60 = vsel %vm229_vm6, %v217_v44, %v237_v54 }
 0x10a   :  { %v211_v50 = vpop.f32.mrf.mxu0  ;;  %745 = vmatprep.mubr.bf16.mxu1 %v247_v46 }
 0x10b   :  { %vm230_vm4 = vcmp.ge.f32.partialorder %v220_v48, 0.0  ;;  %v238_v52 = vmul.f32 0.01, %v220_v48  ;;  %v212_v53 = vadd.f32 %v622_v26, %v211_v50  ;;  %746 = vmatmul.mubr.bf16.vlgmr.msra.gmra.mxu1 %v248_v49  ;;  %v243_v57 = vsel %vm227_vm5, %v209_v41, %v235_v51 }
 0x10c   :  { %785 = vmatpush3.bf16.msra.mxu1 %v817_v20 }
 0x10d   :  { %vm228_vm7 = vcmp.ge.f32.partialorder %v212_v53, 0.0  ;;  %v236_v55 = vmul.f32 0.01, %v212_v53  ;;  %778 = vmatprep.subr.bf16.mxu1 %v949_v21  ;;  %v246_v56 = vsel %vm230_vm4, %v220_v48, %v238_v52 }
 0x10e   :  { %v250_v61 = vpack.c.bf16 %v246_v56, %v245_v60 }
 0x10f   :  { %v244_v58 = vsel %vm228_vm7, %v212_v53, %v236_v55 }
 0x110   :  { %v249_v59 = vpack.c.bf16 %v244_v58, %v243_v57  ;;  %786 = vmatpush3.bf16.msra.mxu1 %v949_v21 }
 0x111   :  { %779 = vmatprep.subr.bf16.mxu1 %v819_v22 }
 0x112   :  { %749 = vmatprep.mubr.bf16.mxu1 %v249_v59 }
 0x113   :  { %750 = vmatmul.mubr.bf16.gmra.mxu1 %v250_v61 }
 0x114   :  { %787 = vmatpush3.bf16.msra.mxu1 %v819_v22 }
 0x115   :  { %780 = vmatprep.subr.bf16.mxu1 %v820_v23 }
 0x118   :  { %788 = vmatpush3.bf16.msra.mxu1 %v820_v23 }
 0x119   :  { %781 = vmatprep.subr.bf16.mxu1 %v821_v24 }
 0x11c   :  { %789 = vmatpush3.bf16.msra.mxu1 %v821_v24 }
 0x11d   :  { %782 = vmatprep.subr.bf16.mxu1 %v822_v62 }
 0x120   :  { %790 = vmatpush3.bf16.msra.mxu1 %v822_v62 }
 0x121   :  { %783 = vmatprep.subr.bf16.mxu1 %v823_v63 }
 0x124   :  { %791 = vmatpush3.bf16.msra.mxu1 %v823_v63 }
 0x125   :  { %784 = vmatprep.subr.bf16.mxu1 %v824_v0 }
 0x128   :  { %792 = vmatpush3.bf16.msra.mxu1 %v824_v0 }
 0x1cb   :  { %v747_v1 = vpop.f32.mrf.mxu1 }
 0x1cc   :  { %v365_v5 = vadd.f32 %v747_v1, %v635_v2 }
 0x1cd   :  { %v356_v3 = vpop.f32.mrf.mxu1 }
 0x1ce   :  { %v357_v4 = vadd.f32 %v635_v2, %v356_v3  ;;  %v397_v12 = vmul.f32 0.01, %v365_v5  ;;  %vm389_vm10 = vcmp.ge.f32.partialorder %v365_v5, 0.0 }
 0x1cf   :  { %v748_v6 = vpop.f32.mrf.mxu1 }
 0x1d0   :  { %v368_v7 = vadd.f32 %v748_v6, %v635_v2  ;;  %v395_v9 = vmul.f32 0.01, %v357_v4  ;;  %vm387_vm9 = vcmp.ge.f32.partialorder %v357_v4, 0.0  ;;  %v405_v20 = vsel %vm389_vm10, %v365_v5, %v397_v12 }
 0x1d1   :  { %v359_v8 = vpop.f32.mrf.mxu1 }
 0x1d2   :  { %vm390_vm8 = vcmp.ge.f32.partialorder %v368_v7, 0.0  ;;  %v398_v10 = vmul.f32 0.01, %v368_v7  ;;  %v360_v11 = vadd.f32 %v635_v2, %v359_v8  ;;  %v403_v18 = vsel %vm387_vm9, %v357_v4, %v395_v9 }
 0x1d3   :  { %v751_v13 = vpop.f32.mrf.mxu1 }
 0x1d4   :  { %vm388_vm11 = vcmp.ge.f32.partialorder %v360_v11, 0.0  ;;  %v396_v14 = vmul.f32 0.01, %v360_v11  ;;  %v406_v15 = vsel %vm390_vm8, %v368_v7, %v398_v10  ;;  %v381_v21 = vadd.f32 %v751_v13, %v635_v2 }
 0x1d5   :  { %v372_v16 = vpop.f32.mrf.mxu1  ;;  %v412_v24 = vpack.c.bf16 %v406_v15, %v405_v20 }
 0x1d6   :  { %v373_v17 = vadd.f32 %v635_v2, %v372_v16  ;;  %v404_v19 = vsel %vm388_vm11, %v360_v11, %v396_v14  ;;  %v401_v30 = vmul.f32 0.01, %v381_v21  ;;  %vm393_vm14 = vcmp.ge.f32.partialorder %v381_v21, 0.0 }
 0x1d7   :  { %v752_v22 = vpop.f32.mrf.mxu1  ;;  %v411_v23 = vpack.c.bf16 %v404_v19, %v403_v18 }
 0x1d8   :  { %v384_v25 = vadd.f32 %v752_v22, %v635_v2  ;;  %v399_v27 = vmul.f32 0.01, %v373_v17  ;;  %vm391_vm13 = vcmp.ge.f32.partialorder %v373_v17, 0.0  ;;  %v409_v35 = vsel %vm393_vm14, %v381_v21, %v401_v30 }
 0x1d9   :  { %v375_v26 = vpop.f32.mrf.mxu1  ;;  %769 = vmatprep.mubr.bf16.mxu0 %v411_v23 }
 0x1da   :  { %vm394_vm12 = vcmp.ge.f32.partialorder %v384_v25, 0.0  ;;  %v402_v28 = vmul.f32 0.01, %v384_v25  ;;  %v376_v29 = vadd.f32 %v635_v2, %v375_v26  ;;  %770 = vmatmul.mubr.bf16.vlgmr.msra.gmra.mxu0 %v412_v24  ;;  %v407_v33 = vsel %vm391_vm13, %v373_v17, %v399_v27 }
 0x1dc   :  { %vm392_vm15 = vcmp.ge.f32.partialorder %v376_v29, 0.0  ;;  %v400_v31 = vmul.f32 0.01, %v376_v29  ;;  %v410_v32 = vsel %vm394_vm12, %v384_v25, %v402_v28 }
 0x1dd   :  { %v414_v37 = vpack.c.bf16 %v410_v32, %v409_v35 }
 0x1de   :  { %v408_v34 = vsel %vm392_vm15, %v376_v29, %v400_v31 }
 0x1df   :  { %v413_v36 = vpack.c.bf16 %v408_v34, %v407_v33 }
 0x1e1   :  { %773 = vmatprep.mubr.bf16.mxu1 %v413_v36 }
 0x1e2   :  { %774 = vmatmul.mubr.bf16.vlgmr.msra.gmra.mxu1 %v414_v37 }
 0x29a   :  { %v771_v39 = vpop.f32.mrf.mxu0 }
 0x29b   :  { %v529_v40 = vadd.f32 %v771_v39, %v644_v38 }
 0x29c   :  { %v520_v41 = vpop.f32.mrf.mxu0 }
 0x29d   :  { %vm553_vm0 = vcmp.ge.f32.partialorder %v529_v40, 0.0  ;;  %v561_v42 = vmul.f32 0.01, %v529_v40  ;;  %v521_v43 = vadd.f32 %v644_v38, %v520_v41 }
 0x29e   :  { %v772_v44 = vpop.f32.mrf.mxu0 }
 0x29f   :  { %v569_v45 = vsel %vm553_vm0, %v529_v40, %v561_v42  ;;  %vm551_vm2 = vcmp.ge.f32.partialorder %v521_v43, 0.0  ;;  %v559_v46 = vmul.f32 0.01, %v521_v43  ;;  %v532_v47 = vadd.f32 %v772_v44, %v644_v38 }
 0x2a0   :  { %v663_v48 = vpack.c.bf16 %v569_v45, %v569_v45  ;;  %v523_v49 = vpop.f32.mrf.mxu0 }
 0x2a1   :  { %v567_v50 = vsel %vm551_vm2, %v521_v43, %v559_v46  ;;  %vm554_vm3 = vcmp.ge.f32.partialorder %v532_v47, 0.0  ;;  %v562_v51 = vmul.f32 0.01, %v532_v47  ;;  %v524_v52 = vadd.f32 %v644_v38, %v523_v49 }
 0x2a2   :  { %610 = vst.msk [vmem:[%s1021_s7 + $0x8] sm:$0xf] %vm607_vm1, %v663_v48  ;;  %v661_v53 = vpack.c.bf16 %v567_v50, %v567_v50  ;;  %v775_v54 = vpop.f32.mrf.mxu1 }
 0x2a3   :  { %v570_v55 = vsel %vm554_vm3, %v532_v47, %v562_v51  ;;  %vm552_vm4 = vcmp.ge.f32.partialorder %v524_v52, 0.0  ;;  %v560_v56 = vmul.f32 0.01, %v524_v52  ;;  %v545_v57 = vadd.f32 %v775_v54, %v644_v38 }
 0x2a4   :  { %608 = vst.msk [vmem:[%s1021_s7] sm:$0xf] %vm607_vm1, %v661_v53  ;;  %v664_v58 = vpack.c.bf16 %v570_v55, %v570_v55  ;;  %v536_v59 = vpop.f32.mrf.mxu1 }
 0x2a5   :  { %v568_v60 = vsel %vm552_vm4, %v524_v52, %v560_v56  ;;  %vm557_vm5 = vcmp.ge.f32.partialorder %v545_v57, 0.0  ;;  %v565_v61 = vmul.f32 0.01, %v545_v57  ;;  %v537_v62 = vadd.f32 %v644_v38, %v536_v59 }
 0x2a6   :  { %611 = vst.msk [vmem:[%s1021_s7 + $0xc] sm:$0xf] %vm607_vm1, %v664_v58  ;;  %v662_v63 = vpack.c.bf16 %v568_v60, %v568_v60  ;;  %v776_v0 = vpop.f32.mrf.mxu1 }
 0x2a7   :  { %v573_v1 = vsel %vm557_vm5, %v545_v57, %v565_v61  ;;  %vm555_vm6 = vcmp.ge.f32.partialorder %v537_v62, 0.0  ;;  %v563_v2 = vmul.f32 0.01, %v537_v62  ;;  %v548_v3 = vadd.f32 %v776_v0, %v644_v38 }
 0x2a8   :  { %609 = vst.msk [vmem:[%s1021_s7 + $0x4] sm:$0xf] %vm607_vm1, %v662_v63  ;;  %v667_v4 = vpack.c.bf16 %v573_v1, %v573_v1  ;;  %v539_v5 = vpop.f32.mrf.mxu1 }
 0x2a9   :  { %v571_v6 = vsel %vm555_vm6, %v537_v62, %v563_v2  ;;  %vm558_vm7 = vcmp.ge.f32.partialorder %v548_v3, 0.0  ;;  %v566_v7 = vmul.f32 0.01, %v548_v3  ;;  %v540_v8 = vadd.f32 %v644_v38, %v539_v5 }
 0x2aa   :  { %614 = vst.msk [vmem:[%s1021_s7 + $0x18] sm:$0xf] %vm607_vm1, %v667_v4  ;;  %v665_v9 = vpack.c.bf16 %v571_v6, %v571_v6 }
 0x2ab   :  { %v574_v10 = vsel %vm558_vm7, %v548_v3, %v566_v7  ;;  %vm556_vm8 = vcmp.ge.f32.partialorder %v540_v8, 0.0  ;;  %v564_v11 = vmul.f32 0.01, %v540_v8 }
 0x2ac   :  { %612 = vst.msk [vmem:[%s1021_s7 + $0x10] sm:$0xf] %vm607_vm1, %v665_v9  ;;  %v668_v12 = vpack.c.bf16 %v574_v10, %v574_v10 }
 0x2ad   :  { %v572_v13 = vsel %vm556_vm8, %v540_v8, %v564_v11 }
 0x2ae   :  { %615 = vst.msk [vmem:[%s1021_s7 + $0x1c] sm:$0xf] %vm607_vm1, %v668_v12  ;;  %v666_v14 = vpack.c.bf16 %v572_v13, %v572_v13 }
 0x2b0   :  { %613 = vst.msk [vmem:[%s1021_s7 + $0x14] sm:$0xf] %vm607_vm1, %v666_v14 }
 0x2b1   :  { %620 = vsyncpa [#allocation3], 1 }
 0x2b2   :  { %621 = vsyncpa [#allocation5], 1 }

</bundles_post_ra>
